<compile_context>
chip_gen: v6e
topology: v6e:2x2x1
jax: 0.10.0
libtpu: 0.0.40
codegen_flags: <defaults>
</compile_context>

<pallas_src>
import functools

import jax
import jax.numpy as jnp
from jax.experimental import pallas as pl
from jax.experimental.pallas import tpu as pltpu

_LANE = 128


# -----------------------------------------------------------------------------
# Helpers
# -----------------------------------------------------------------------------
def _full_spec(shape):
    """BlockSpec covering a whole (small) array, usable at any grid rank."""
    nd = len(shape)
    return pl.BlockSpec(shape, lambda *_: (0,) * nd)


def _vmem_capacity_bytes():
    """Per-core VMEM capacity; conservative 64 MiB (v7x) if the query fails."""
    try:
        cap = getattr(pltpu.get_tpu_info(), "vmem_capacity_bytes", None)
        if cap:
            return int(cap)
    except Exception:
        pass
    return 64 * 1024 * 1024


def _vmem_limit(need_bytes, cap):
    return min(int(0.9 * cap), max(int(need_bytes), 32 * 1024 * 1024))


def _plan_hw_tiling(c, hw, itemsize, budget, min_tiles=1):
    """Pick (hw_padded, tile): tile % 128 == 0, tile divides hw_padded, and
    c * tile * itemsize roughly fits `budget` (with a 128-lane floor)."""
    hw_pad = -(-hw // _LANE) * _LANE
    max_tile = max(_LANE, (budget // max(1, c * itemsize)) // _LANE * _LANE)
    max_tile = min(max_tile, hw_pad)
    # Largest multiple of 128 <= max_tile dividing hw_pad.
    tile = _LANE
    t = max_tile
    while t >= _LANE:
        if hw_pad % t == 0:
            tile = t
            break
        t -= _LANE
    # Ragged HW whose only small divisor is tiny (e.g. 128 * large prime):
    # pad HW up to a multiple of max_tile instead of crawling at 128 lanes.
    if tile * 2 <= max_tile:
        tile = max_tile
        hw_pad = -(-hw_pad // tile) * tile
    # Guarantee >= min_tiles spatial tiles (keeps v7x's 2nd TensorCore busy).
    while (hw_pad // tile) < min_tiles and tile % (2 * _LANE) == 0:
        tile //= 2
    return hw_pad, tile


def _largest_dividing_tile(hw_pad, max_tile):
    """Largest multiple of 128 <= max_tile that divides hw_pad."""
    t = min((max_tile // _LANE) * _LANE, hw_pad)
    while t >= _LANE:
        if hw_pad % t == 0:
            return t
        t -= _LANE
    return min(_LANE, hw_pad)


# -----------------------------------------------------------------------------
# Kernels
# -----------------------------------------------------------------------------
def _cse_gate(gap_col, w1t_ref, b1_ref, w2t_ref, b2_ref):
    """Tiny cSE MLP on a (C, 1) column: sigmoid(W2t @ relu(W1t @ gap + b1) + b2)."""
    h = jnp.maximum(
        jnp.dot(w1t_ref[...], gap_col, preferred_element_type=jnp.float32)
        + b1_ref[...], 0.0)                                          # (Cmid, 1)
    return jax.nn.sigmoid(
        jnp.dot(w2t_ref[...], h, preferred_element_type=jnp.float32)
        + b2_ref[...])                                               # (C, 1)


def _scse_fused_kernel(x_ref, w1t_ref, b1_ref, w2t_ref, b2_ref, ws_ref, bs_ref,
                       o_ref, *, inv_hw):
    """Single-pass SCSE: whole (C, HW) image slab resident in VMEM."""
    x = x_ref[0]                                                     # (C, HW) native dtype
    gap = jnp.sum(x, axis=1, keepdims=True, dtype=jnp.float32) * inv_hw   # (C, 1)
    cse = _cse_gate(gap, w1t_ref, b1_ref, w2t_ref, b2_ref)           # (C, 1)  f32
    s = jnp.dot(ws_ref[...], x, preferred_element_type=jnp.float32) + bs_ref[0]
    sse = jax.nn.sigmoid(s)                                          # (1, HW) f32
    gate = (cse + sse).astype(x.dtype)                               # cast once
    o_ref[0] = (x * gate).astype(o_ref.dtype)                        # native-dtype multiply


def _gap_kernel(x_ref, o_ref, acc_ref, *, inv_hw):
    """Two-pass path, pass 1: global average pool, tiled over HW (lane axis)."""
    @pl.when(pl.program_id(1) == 0)
    def _():
        acc_ref[...] = jnp.zeros_like(acc_ref)

    acc_ref[...] += jnp.sum(x_ref[0], axis=1, keepdims=True, dtype=jnp.float32)

    @pl.when(pl.program_id(1) == pl.num_programs(1) - 1)
    def _():
        o_ref[0] = acc_ref[...] * inv_hw


def _scse_gate_kernel(x_ref, gap_ref, w1t_ref, b1_ref, w2t_ref, b2_ref,
                      ws_ref, bs_ref, o_ref):
    """Two-pass path, pass 2: fused cSE MLP + sSE + gating, tiled over (N, HW)."""
    x = x_ref[0]                                                     # (C, THW)
    # Recompute the tiny cSE MLP every tile (a few hundred FLOPs, hidden under
    # the tile DMA); avoids cross-step scratch so both grid axes stay parallel.
    cse = _cse_gate(gap_ref[0], w1t_ref, b1_ref, w2t_ref, b2_ref)    # (C, 1)
    s = jnp.dot(ws_ref[...], x, preferred_element_type=jnp.float32) + bs_ref[0]
    sse = jax.nn.sigmoid(s)                                          # (1, THW)
    gate = (cse + sse).astype(x.dtype)
    o_ref[0] = (x * gate).astype(o_ref.dtype)


# -----------------------------------------------------------------------------
# Wrapper
# -----------------------------------------------------------------------------
def scse_pallas(x_nchw, w1, b1, w2, b2, ws, bs, *,
                max_fused_slab_bytes=None, max_block_bytes=None,
                donate_input=False):
    """SCSE forward.  x_nchw: (N, C, H, W); returns the same shape/dtype.

    w1: (C, Cmid), b1: (Cmid,)  -- cSE conv1 (applied as gap @ w1 + b1)
    w2: (Cmid, C), b2: (C,)     -- cSE conv2
    ws: (C, 1),    bs: (1,)     -- sSE conv
    max_fused_slab_bytes: cap on C*HW*itemsize for the fused path (0 disables).
    max_block_bytes: per-tile VMEM budget for the two-pass gate kernel.
    donate_input: alias x's HBM buffer to the output (use only if x is dead).
    """
    N, C, H, W = x_nchw.shape
    HW = H * W
    dtype = x_nchw.dtype
    itemsize = jnp.dtype(dtype).itemsize
    cap = _vmem_capacity_bytes()

    x = x_nchw.reshape(N, C, HW)                 # pure reshape, no HBM transpose

    # cSE weights laid out so every in-kernel intermediate is a (rows, 1)
    # column vector (no in-kernel transposes); sSE weight as a lane row in x's
    # dtype so bf16 inputs are never upcast wholesale.
    w1t = jnp.asarray(w1, jnp.float32).T                 # (Cmid, C)
    b1c = jnp.asarray(b1, jnp.float32).reshape(-1, 1)    # (Cmid, 1)
    w2t = jnp.asarray(w2, jnp.float32).T                 # (C, Cmid)
    b2c = jnp.asarray(b2, jnp.float32).reshape(-1, 1)    # (C, 1)
    ws_row = jnp.asarray(ws, dtype).reshape(1, C)        # (1, C)
    bs_s = jnp.asarray(bs, jnp.float32).reshape(1)       # SMEM scalar

    alias = {0: 0} if donate_input else {}
    inv_hw = 1.0 / float(HW)

    # ------------------- fused single-pass path -------------------
    slab = C * HW * itemsize
    # 2x double-buffered in + out (native dtype) + f32 elementwise temporaries.
    fused_need = 4 * slab + 3 * C * HW * 4 + (4 << 20)
    fuse = fused_need <= int(0.9 * cap)
    if max_fused_slab_bytes is not None:
        fuse = fuse and slab <= max_fused_slab_bytes
    # TODO(synk): on dual-TensorCore parts with N == 1 the fused grid is (1,)
    # and the second core idles; force the two-pass path via
    # max_fused_slab_bytes=0 there if that matters for your deployment.
    if fuse:
        out = pl.pallas_call(
            functools.partial(_scse_fused_kernel, inv_hw=inv_hw),
            out_shape=jax.ShapeDtypeStruct((N, C, HW), dtype),
            grid_spec=pltpu.PrefetchScalarGridSpec(
                num_scalar_prefetch=0,
                grid=(N,),
                in_specs=[
                    pl.BlockSpec((1, C, HW), lambda n: (n, 0, 0)),
                    _full_spec(w1t.shape), _full_spec(b1c.shape),
                    _full_spec(w2t.shape), _full_spec(b2c.shape),
                    _full_spec(ws_row.shape),
                    pl.BlockSpec(memory_space=pltpu.MemorySpace.SMEM),
                ],
                out_specs=pl.BlockSpec((1, C, HW), lambda n: (n, 0, 0)),
            ),
            compiler_params=pltpu.CompilerParams(
                dimension_semantics=("parallel",),
                vmem_limit_bytes=_vmem_limit(fused_need, cap)),
            input_output_aliases=alias,
        )(x, w1t, b1c, w2t, b2c, ws_row, bs_s)
        return out.reshape(N, C, H, W)

    # ------------------- two-pass fallback (large images) -------------------
    gate_budget = max_block_bytes if max_block_bytes is not None else cap // 10
    gap_budget = 2 * gate_budget          # GAP pass double-buffers only its input

    min_gate_tiles = max(1, -(-4 // N))   # keep >= ~4 grid points for megacore
    hw_pad, gate_tile = _plan_hw_tiling(C, HW, itemsize, gate_budget,
                                        min_tiles=min_gate_tiles)
    gap_max = max(_LANE, (gap_budget // max(1, C * itemsize)) // _LANE * _LANE)
    gap_tile = _largest_dividing_tile(hw_pad, gap_max)

    if hw_pad != HW:
        # Zero padding: GAP still divides by the true HW; padded outputs sliced.
        x = jnp.pad(x, ((0, 0), (0, 0), (0, hw_pad - HW)))

    # Pass 1: spatially tiled global average pool.
    gap_need = 2 * C * gap_tile * itemsize + 2 * C * gap_tile * 4 + (4 << 20)
    gap = pl.pallas_call(
        functools.partial(_gap_kernel, inv_hw=inv_hw),
        out_shape=jax.ShapeDtypeStruct((N, C, 1), jnp.float32),
        grid_spec=pltpu.PrefetchScalarGridSpec(
            num_scalar_prefetch=0,
            grid=(N, hw_pad // gap_tile),
            in_specs=[pl.BlockSpec((1, C, gap_tile), lambda n, t: (n, 0, t))],
            out_specs=pl.BlockSpec((1, C, 1), lambda n, t: (n, 0, 0)),
            scratch_shapes=[pltpu.VMEM((C, 1), jnp.float32)],
        ),
        compiler_params=pltpu.CompilerParams(
            dimension_semantics=("parallel", "arbitrary"),
            vmem_limit_bytes=_vmem_limit(gap_need, cap)),
    )(x)

    # Pass 2: fused cSE-MLP + sSE + gating, tiled over (N, HW).
    gate_need = 4 * C * gate_tile * itemsize + 3 * C * gate_tile * 4 + (4 << 20)
    out = pl.pallas_call(
        _scse_gate_kernel,
        out_shape=jax.ShapeDtypeStruct((N, C, hw_pad), dtype),
        grid_spec=pltpu.PrefetchScalarGridSpec(
            num_scalar_prefetch=0,
            grid=(N, hw_pad // gate_tile),
            in_specs=[
                pl.BlockSpec((1, C, gate_tile), lambda n, t: (n, 0, t)),
                pl.BlockSpec((1, C, 1), lambda n, t: (n, 0, 0)),
                _full_spec(w1t.shape), _full_spec(b1c.shape),
                _full_spec(w2t.shape), _full_spec(b2c.shape),
                _full_spec(ws_row.shape),
                pl.BlockSpec(memory_space=pltpu.MemorySpace.SMEM),
            ],
            out_specs=pl.BlockSpec((1, C, gate_tile), lambda n, t: (n, 0, t)),
        ),
        compiler_params=pltpu.CompilerParams(
            dimension_semantics=("parallel", "parallel"),
            vmem_limit_bytes=_vmem_limit(gate_need, cap)),
        input_output_aliases=alias,
    )(x, gap, w1t, b1c, w2t, b2c, ws_row, bs_s)

    if hw_pad != HW:
        out = out[:, :, :HW]
    return out.reshape(N, C, H, W)


# -----------------------------------------------------------------------------
# Pure-JAX reference (NCHW) and self-test
# -----------------------------------------------------------------------------
def scse_reference(x, w1, b1, w2, b2, ws, bs):
    gap = jnp.mean(x.astype(jnp.float32), axis=(2, 3))               # (N, C)
    h = jnp.maximum(gap @ w1 + b1, 0.0)                              # (N, Cmid)
    cse = jax.nn.sigmoid(h @ w2 + b2)[:, :, None, None]              # (N, C, 1, 1)
    s = jnp.einsum("nchw,c->nhw", x.astype(jnp.float32), ws[:, 0]) + bs[0]
    sse = jax.nn.sigmoid(s)[:, None, :, :]                           # (N, 1, H, W)
    return (x * cse + x * sse).astype(x.dtype)


if __name__ == "__main__":
    key = jax.random.PRNGKey(0)
    N, C, H, W = 2, 32, 16, 16
    reduction = 16
    Cmid = C // reduction

    k = jax.random.split(key, 7)
    x = jax.random.normal(k[0], (N, C, H, W), dtype=jnp.float32)
    w1 = 0.1 * jax.random.normal(k[1], (C, Cmid), dtype=jnp.float32)   # cSE conv1
    b1 = 0.1 * jax.random.normal(k[2], (Cmid,), dtype=jnp.float32)
    w2 = 0.1 * jax.random.normal(k[3], (Cmid, C), dtype=jnp.float32)   # cSE conv2
    b2 = 0.1 * jax.random.normal(k[4], (C,), dtype=jnp.float32)
    ws = 0.1 * jax.random.normal(k[5], (C, 1), dtype=jnp.float32)      # sSE conv
    bs = 0.1 * jax.random.normal(k[6], (1,), dtype=jnp.float32)

    ref = scse_reference(x, w1, b1, w2, b2, ws, bs)

    # 1) Fused single-pass path (default at this size).
    out = jax.block_until_ready(scse_pallas(x, w1, b1, w2, b2, ws, bs))
    assert out.shape == (N, C, H, W)
    assert jnp.allclose(out, ref, atol=1e-5, rtol=1e-5), "mismatch (fused)"

    # 2) Two-pass tiled fallback (forces spatial tiling + GAP accumulation).
    out2 = jax.block_until_ready(
        scse_pallas(x, w1, b1, w2, b2, ws, bs,
                    max_fused_slab_bytes=0, max_block_bytes=8 * 1024))
    assert jnp.allclose(out2, ref, atol=1e-5, rtol=1e-5), "mismatch (two-pass)"

    # 3) Ragged spatial size (HW not a multiple of 128) on both paths.
    Hr, Wr = 10, 12
    xr = jax.random.normal(k[0], (N, C, Hr, Wr), dtype=jnp.float32)
    refr = scse_reference(xr, w1, b1, w2, b2, ws, bs)
    outr = jax.block_until_ready(scse_pallas(xr, w1, b1, w2, b2, ws, bs))
    assert jnp.allclose(outr, refr, atol=1e-5, rtol=1e-5), "mismatch (fused ragged)"
    outr2 = jax.block_until_ready(
        scse_pallas(xr, w1, b1, w2, b2, ws, bs, max_fused_slab_bytes=0))
    assert jnp.allclose(outr2, refr, atol=1e-5, rtol=1e-5), "mismatch (two-pass ragged)"

    print("KERNEL_OK")
</pallas_src>

<mosaic_0001>
module attributes {stable_mosaic.version = 11 : i64} {
  func.func @_scse_fused_kernel(%arg0: i32, %arg1: memref<1x32x256xf32, #tpu.memory_space<vmem>>, %arg2: memref<2x32xf32, #tpu.memory_space<vmem>>, %arg3: memref<2x1xf32, #tpu.memory_space<vmem>>, %arg4: memref<32x2xf32, #tpu.memory_space<vmem>>, %arg5: memref<32x1xf32, #tpu.memory_space<vmem>>, %arg6: memref<1x32xf32, #tpu.memory_space<vmem>>, %arg7: memref<1xf32, #tpu.memory_space<smem>>, %arg8: memref<1x32x256xf32, #tpu.memory_space<vmem>>) attributes {dimension_semantics = [#tpu.dimension_semantics<parallel>], iteration_bounds = array<i64: 2>, scalar_prefetch = 0 : i64, scratch_operands = 0 : i64, tpu.core_type = #tpu.core_type<tc>, window_params = [{transform_indices = @transform_0, window_bounds = array<i64: 1, 32, 256>}, {pipeline_mode = #tpu.pipeline_mode<synchronous>, transform_indices = @transform_1, window_bounds = array<i64: 2, 32>}, {pipeline_mode = #tpu.pipeline_mode<synchronous>, transform_indices = @transform_2, window_bounds = array<i64: 2, 1>}, {pipeline_mode = #tpu.pipeline_mode<synchronous>, transform_indices = @transform_3, window_bounds = array<i64: 32, 2>}, {pipeline_mode = #tpu.pipeline_mode<synchronous>, transform_indices = @transform_4, window_bounds = array<i64: 32, 1>}, {pipeline_mode = #tpu.pipeline_mode<synchronous>, transform_indices = @transform_5, window_bounds = array<i64: 1, 32>}, {transform_indices = @transform_6, window_bounds = array<i64: 1>}, {transform_indices = @transform_7, window_bounds = array<i64: 1, 32, 256>}]} {
    %c0 = arith.constant 0 : index
    %c0_0 = arith.constant 0 : index
    %c0_1 = arith.constant 0 : index
    %0 = vector.load %arg1[%c0, %c0_0, %c0_1] : memref<1x32x256xf32, #tpu.memory_space<vmem>>, vector<1x32x256xf32>
    %1 = vector.shape_cast %0 : vector<1x32x256xf32> to vector<32x256xf32>
    %cst = arith.constant dense<0.000000e+00> : vector<32xf32>
    %2 = vector.multi_reduction <add>, %1, %cst [1] : vector<32x256xf32> to vector<32xf32>
    %3 = vector.shape_cast %2 : vector<32xf32> to vector<32x1xf32>
    %cst_2 = arith.constant 3.906250e-03 : f32
    %4 = vector.broadcast %cst_2 : f32 to vector<32x1xf32>
    %5 = arith.mulf %3, %4 : vector<32x1xf32>
    %c0_3 = arith.constant 0 : index
    %c0_4 = arith.constant 0 : index
    %6 = vector.load %arg2[%c0_3, %c0_4] : memref<2x32xf32, #tpu.memory_space<vmem>>, vector<2x32xf32>
    %cst_5 = arith.constant dense<0.000000e+00> : vector<2x1xf32>
    %7 = tpu.matmul %6, %5, %cst_5 {dimension_numbers = #tpu.dot_dimension_numbers<[1], [0], [0], [1], [0, 0, 1, 1], [], []>} : vector<2x32xf32>, vector<32x1xf32>, vector<2x1xf32> -> vector<2x1xf32>
    %c0_6 = arith.constant 0 : index
    %c0_7 = arith.constant 0 : index
    %8 = vector.load %arg3[%c0_6, %c0_7] : memref<2x1xf32, #tpu.memory_space<vmem>>, vector<2x1xf32>
    %9 = arith.addf %7, %8 : vector<2x1xf32>
    %cst_8 = arith.constant 0.000000e+00 : f32
    %10 = vector.broadcast %cst_8 : f32 to vector<2x1xf32>
    %11 = arith.maximumf %9, %10 : vector<2x1xf32>
    %c0_9 = arith.constant 0 : index
    %c0_10 = arith.constant 0 : index
    %12 = vector.load %arg4[%c0_9, %c0_10] : memref<32x2xf32, #tpu.memory_space<vmem>>, vector<32x2xf32>
    %cst_11 = arith.constant dense<0.000000e+00> : vector<32x1xf32>
    %13 = tpu.matmul %12, %11, %cst_11 {dimension_numbers = #tpu.dot_dimension_numbers<[1], [0], [0], [1], [0, 0, 1, 1], [], []>} : vector<32x2xf32>, vector<2x1xf32>, vector<32x1xf32> -> vector<32x1xf32>
    %c0_12 = arith.constant 0 : index
    %c0_13 = arith.constant 0 : index
    %14 = vector.load %arg5[%c0_12, %c0_13] : memref<32x1xf32, #tpu.memory_space<vmem>>, vector<32x1xf32>
    %15 = arith.addf %13, %14 : vector<32x1xf32>
    %16 = arith.negf %15 : vector<32x1xf32>
    %17 = math.exp %16 : vector<32x1xf32>
    %cst_14 = arith.constant 1.000000e+00 : f32
    %18 = vector.broadcast %cst_14 : f32 to vector<32x1xf32>
    %19 = arith.addf %18, %17 : vector<32x1xf32>
    %20 = arith.divf %18, %19 : vector<32x1xf32>
    %c0_15 = arith.constant 0 : index
    %c0_16 = arith.constant 0 : index
    %21 = vector.load %arg6[%c0_15, %c0_16] : memref<1x32xf32, #tpu.memory_space<vmem>>, vector<1x32xf32>
    %cst_17 = arith.constant dense<0.000000e+00> : vector<1x256xf32>
    %22 = tpu.matmul %21, %1, %cst_17 {dimension_numbers = #tpu.dot_dimension_numbers<[1], [0], [0], [1], [0, 0, 1, 1], [], []>} : vector<1x32xf32>, vector<32x256xf32>, vector<1x256xf32> -> vector<1x256xf32>
    %c0_18 = arith.constant 0 : index
    %23 = memref.load %arg7[%c0_18] : memref<1xf32, #tpu.memory_space<smem>>
    %24 = vector.broadcast %23 : f32 to vector<1x256xf32>
    %25 = arith.addf %22, %24 : vector<1x256xf32>
    %26 = arith.negf %25 : vector<1x256xf32>
    %27 = math.exp %26 : vector<1x256xf32>
    %cst_19 = arith.constant 1.000000e+00 : f32
    %28 = vector.broadcast %cst_19 : f32 to vector<1x256xf32>
    %29 = arith.addf %28, %27 : vector<1x256xf32>
    %30 = arith.divf %28, %29 : vector<1x256xf32>
    %31 = vector.broadcast %20 : vector<32x1xf32> to vector<32x256xf32>
    %32 = vector.broadcast %30 : vector<1x256xf32> to vector<32x256xf32>
    %33 = arith.addf %31, %32 : vector<32x256xf32>
    %34 = arith.mulf %1, %33 : vector<32x256xf32>
    %c0_20 = arith.constant 0 : index
    %c0_21 = arith.constant 0 : index
    %c0_22 = arith.constant 0 : index
    %35 = vector.load %arg8[%c0_20, %c0_21, %c0_22] : memref<1x32x256xf32, #tpu.memory_space<vmem>>, vector<1x32x256xf32>
    %36 = vector.shape_cast %35 : vector<1x32x256xf32> to vector<32x256xf32>
    %37 = vector.shape_cast %34 : vector<32x256xf32> to vector<1x32x256xf32>
    tpu.vector_store %arg8[%c0_20, %c0_21, %c0_22], %37 {strides = array<i32>} : memref<1x32x256xf32, #tpu.memory_space<vmem>>, vector<1x32x256xf32>,
    return
  }
  func.func @transform_0(%arg0: i32) -> (i32, i32, i32) {
    %c0_i32 = arith.constant 0 : i32
    %c0_i32_0 = arith.constant 0 : i32
    %c0_i32_1 = arith.constant 0 : i32
    return %arg0, %c0_i32, %c0_i32_0 : i32, i32, i32
  }
  func.func @transform_1(%arg0: i32) -> (i32, i32) {
    %c0_i32 = arith.constant 0 : i32
    %c0_i32_0 = arith.constant 0 : i32
    %c0_i32_1 = arith.constant 0 : i32
    return %c0_i32, %c0_i32_0 : i32, i32
  }
  func.func @transform_2(%arg0: i32) -> (i32, i32) {
    %c0_i32 = arith.constant 0 : i32
    %c0_i32_0 = arith.constant 0 : i32
    %c0_i32_1 = arith.constant 0 : i32
    return %c0_i32, %c0_i32_0 : i32, i32
  }
  func.func @transform_3(%arg0: i32) -> (i32, i32) {
    %c0_i32 = arith.constant 0 : i32
    %c0_i32_0 = arith.constant 0 : i32
    %c0_i32_1 = arith.constant 0 : i32
    return %c0_i32, %c0_i32_0 : i32, i32
  }
  func.func @transform_4(%arg0: i32) -> (i32, i32) {
    %c0_i32 = arith.constant 0 : i32
    %c0_i32_0 = arith.constant 0 : i32
    %c0_i32_1 = arith.constant 0 : i32
    return %c0_i32, %c0_i32_0 : i32, i32
  }
  func.func @transform_5(%arg0: i32) -> (i32, i32) {
    %c0_i32 = arith.constant 0 : i32
    %c0_i32_0 = arith.constant 0 : i32
    %c0_i32_1 = arith.constant 0 : i32
    return %c0_i32, %c0_i32_0 : i32, i32
  }
  func.func @transform_6(%arg0: i32) -> i32 {
    %c0_i32 = arith.constant 0 : i32
    %c0_i32_0 = arith.constant 0 : i32
    return %c0_i32 : i32
  }
  func.func @transform_7(%arg0: i32) -> (i32, i32, i32) {
    %c0_i32 = arith.constant 0 : i32
    %c0_i32_0 = arith.constant 0 : i32
    %c0_i32_1 = arith.constant 0 : i32
    return %arg0, %c0_i32, %c0_i32_0 : i32, i32, i32
  }
}

</mosaic_0001>

<bundles_post_ra>
// kernel: tpu_custom_call.1
= control target key start
LH: loop header
LB: loop body
LE: loop exit
PB: predicated region body
PF: predicated region fallthrough
CT: control target
= control target key end

     0   :  { %s1281_s0 = inlined_call_operand.hbm [shape: f32[2,32,256], index: 0, kind: input, shape index: {}]   ;;  %s1282_s1 = inlined_call_operand.vmem [shape: f32[2,32], index: 1, kind: input, shape index: {}]   ;;  %s1283_s2 = inlined_call_operand.vmem [shape: f32[2,1], index: 2, kind: input, shape index: {}]   ;;  %s1284_s3 = inlined_call_operand.vmem [shape: f32[32,2], index: 3, kind: input, shape index: {}]   ;;  %s1285_s4 = inlined_call_operand.vmem [shape: f32[32,1], index: 4, kind: input, shape index: {}]   ;;  %s1286_s5 = inlined_call_operand.vmem [shape: f32[1,32], index: 5, kind: input, shape index: {}]   ;;  %s1287_s6 = inlined_call_operand.<no memory space> [shape: f32[1], index: 6, kind: input, shape index: {}]   ;;  %s1288_s7 = inlined_call_operand.hbm [shape: f32[2,32,256], index: 7, kind: output, shape index: {}]  }
   0x1   :  { %12 = sst [smem:[#allocation2]] %s1287_s6 }
   0x2   :  { %13 = vsyncpa [#allocation4], 0 }
   0x3   :  { %15 = vsyncpa [#allocation4 + $0x1], 0 }
   0x4   :  { %16 = vsyncpa [#allocation5], 0 }
   0x5   :  { %18 = vsyncpa [#allocation5 + $0x1], 0  ;;  %s1044_s26 = smov 0   ;;  %s1046_s27 = smov 0  }
   0x6   :  { %s1048_s28 = smov 0   ;;  %s1050_s29 = smov 0  }
   0x7 LB: > { %s1065_s6 = sadd.s32 4294967295, %s990_s29   ;;  %s761_s30 = sadd.s32 4294967294, %s990_s29   ;;  %s990_s29 = sphi %s1050_s29, %s1303_s29   ;;  %s986_s28 = sphi %s1048_s28, %s1302_s28   ;;  %s982_s27 = sphi %s1046_s27, %s1301_s27   ;;  %s978_s26 = sphi %s1044_s26, %s1300_s26  }
   0x8   : > { %s1069_s8 = sadd.s32 1, %s990_s29   ;;  %s31_s9 = sadd.s32 1, %s986_s28 }
   0x9   : > { %s28_s10 = ssub.s32 %s990_s29, %s1069_s8  ;;  %p38_p0 = scmp.ne.s32.totalorder %s986_s28, %s982_s27 }
   0xa   : > { %p29_p1 = scmp.eq.s32.totalorder %s28_s10, 0  ;;  %p39_p2 = scmp.eq.s32.totalorder %s990_s29, 0 }
   0xb   : > { %p44_p3 = scmp.ne.s32.totalorder %s982_s27, %s978_s26  ;;  %p45_p4 = scmp.eq.s32.totalorder %s1065_s6, 0 }
   0xc   : > { %s1081_s11 = scalar_select %p29_p1, %s986_s28, %s31_s9  }
   0xd   : > { %p1083_p5 = por %p39_p2, %p38_p0  ;;  %p1087_p6 = por %p45_p4, %p44_p3 }
   0xe   : > { %p194_p7 = scmp.eq.s32.totalorder %s1065_s6, 1  ;;  %p200_p8 = scmp.eq.s32.totalorder %s761_s30, 1 }
   0xf   : > { %s1292_s13 = scalar_select %p1087_p6, 1, 0 }
  0x10   : > { %p831_p10 = scmp.lt.s32.totalorder %s990_s29, 2  ;;  %p1094_p11 = por %p194_p7, %p38_p0 }
  0x11   : > { %p1098_p12 = por %p200_p8, %p44_p3  ;;  %s238_s16 = sand.u32 1, %s986_s28  }
  0x12   : > { %s1293_s14 = scalar_select %p1094_p11, 1, 0 }
  0x13   : > { %s1294_s15 = scalar_select %p1098_p12, 1, 0 }
  0x14   : > { %s788_s17 = sshll.u32 %s990_s29, 10  ;;  %s764_s18 = sshll.u32 %s238_s16, 6 }
  0x15   : > { %s1107_s21 = scalar_lea.hbm %s1281_s0, %s788_s17  ;;  %s242_s22 = scalar_lea.vmem [#allocation3], %s764_s18 }
  0x16   : > { %s249_s23 = sshll.u32 %s242_s22, 4  ;;  %p1111_p13 = pnand %p831_p10, %p1083_p5  ;;  %s1115_s23 = int_to_ptr.vmem [resolvable:$true] %s249_s23 }
  0x17   : > { %s1117_s25 = scalar_lea.sflag [#allocation4], %s238_s16  ;;  %s898_s30 = scalar_lea.hbm %s1107_s21, 1024 }
  0x18   : > { %p899_p0 = scmp.ne.s32.totalorder %s1107_s21, %s898_s30  ;;  %p900_p1 = pneg %p1111_p13 }
  0x19   : > { %s903_s17 = scalar_lea.hbm %s1281_s0, 2048  ;;  %p904_p4 = scmp.lt.s32.totalorder %s1107_s21, %s1281_s0 }
  0x1a   : > { %p901_p2 = pnand %p900_p1, %p899_p0  ;;  %p905_p5 = scmp.lt.s32.totalorder %s903_s17, %s898_s30 }
  0x1c   : > { %p902_p3 = pneg %p901_p2  ;;  %p906_p7 = por %p905_p5, %p904_p4 }
  0x1e   : > { %p907_p8 = pnand %p906_p7, %p902_p3 }
  0x20   : > { %910 = shalt.err (!%p907_p8)
}
  0x21   : > { %s911_s16 = scalar_lea.vmem %s1115_s23, 1024  ;;  %s992_s19 = smov [#allocation3]  }
  0x22   : > { %p912_p10 = scmp.ne.s32.totalorder %s1115_s23, %s911_s16  ;;  %s916_s20 = sshll.u32 %s992_s19, 4  ;;  %s917_s20 = int_to_ptr.vmem [resolvable:$false] %s916_s20 }
  0x23   : > { %s918_s22 = scalar_lea.vmem %s917_s20, 2048  ;;  %p919_p2 = scmp.lt.s32.totalorder %s1115_s23, %s917_s20 }
  0x24   : > { %p914_p9 = pnand %p912_p10, %p900_p1  ;;  %p920_p12 = scmp.lt.s32.totalorder %s918_s22, %s911_s16 }
  0x26   : > { %p915_p0 = pneg %p914_p9  ;;  %p921_p11 = por %p920_p12, %p919_p2 }
  0x28   : > { %p922_p6 = pnand %p921_p11, %p915_p0 }
  0x2a   : > { %925 = shalt.err (!%p922_p6)
}
  0x2b   : > { %s993_s30 = smov 256   ;;  %s994_s9 = smov 16  }
  0x2c   : > { %826 = dma.hbm_to_vmem [thread:$0]  (!%p1111_p13), %s1107_s21, 1024, %s1115_s23, %s1117_s25, %s993_s30, %s993_s30, %s994_s9  }
  0x2d   : > { %p767_p9 = scmp.ge.s32.totalorder %s990_s29, 1  ;;  %p257_p1 = scmp.lt.s32.totalorder %s990_s29, 3 }
  0x2f   : > { %p258_p3 = pnand %p767_p9, %p257_p1 }
  0x30   : > { %s1141_s10 = sand.u32 (!%p258_p3), 1, %s982_s27   ;;  %p1296_p6 = scmp.ne.s32.totalorder (!%p258_p3), %s1292_s13, 0 }
  0x31   : > { %261 = sbr.rel (%p258_p3) target bundleno = 785 (0x311), region = 48  ;;  %s768_s17 = sshll.u32 (!%p258_p3), %s1141_s10, 6 }
  0x32   : > { %s264_s12 = scalar_lea.sflag (!%p258_p3), [#allocation4], %s1141_s10  ;;  %s267_s18 = scalar_lea.vmem (!%p258_p3), [#allocation3], %s768_s17 }
  0x36   : > { %969 = dma.done.wait (%p1296_p6), %s264_s12, 1024  }
  0x37   : > { %971 = vsyncadd (%p1296_p6), %s264_s12, 4294966272  ;;  %v1151_v0 = vld [vmem:[%s267_s18 + $0x30] sm:$0xff]  ;;  %v1153_v1 = vld [vmem:[%s267_s18 + $0x38] sm:$0xff]  ;;  %v995_v12 = vmov 0.0   ;;  %vm996_vm0 = vmmov 0   ;;  %vm324_vm1 = vcmask 261120  }
  0x38   : > { %v1155_v2 = vld [vmem:[%s267_s18 + $0x20] sm:$0xff]  ;;  %v315_v3 = vadd.f32 %v1153_v1, %v1151_v0  ;;  %v1159_v4 = vld [vmem:[%s267_s18 + $0x28] sm:$0xff]  ;;  %v1161_v5 = vld [vmem:[%s267_s18 + $0x10] sm:$0xff]  ;;  %800 = vmatprep.subr.mxu0 %v995_v12  ;;  %808 = vmatprep.mubr.msk.f32.mxu0 %vm996_vm0, %v995_v12  ;;  %vm407_vm2 = vcmask 15360   ;;  %vm420_vm3 = vcmask 1041408   ;;  %v997_v32 = vmov 0  }
  0x39   : > { %v1163_v6 = vld [vmem:[%s267_s18 + $0x18] sm:$0xff]  ;;  %v1167_v8 = vld [vmem:[%s267_s18] sm:$0xff]  ;;  %v1169_v9 = vld [vmem:[%s267_s18 + $0x8] sm:$0xff]  ;;  %v312_v10 = vadd.f32 %v1159_v4, %v1155_v2  ;;  %873 = vset.pattern.permute.xlu1 %v997_v32  ;;  %872 = vset.pattern.permute.xlu0 %v997_v32  ;;  %s534_s30 = sld [smem:[#allocation2]]  ;;  %s297_s9 = scalar_lea.vmem [#allocation6], %s768_s17 }
  0x3a   : > { %v309_v7 = vadd.f32 %v1163_v6, %v1161_v5  ;;  %316 = vadd.xlane.f32.xlu0 %v315_v3  ;;  %v306_v11 = vadd.f32 %v1169_v9, %v1167_v8  ;;  %v322_v21 = vld [vmem:[%s1282_s1] sm:$0x3]  ;;  %v400_v28 = vld [vmem:[%s1284_s3 + $0x8] sm:$0xff]  ;;  %v401_v29 = vld [vmem:[%s1284_s3 + $0x10] sm:$0xff]  ;;  %s789_s12 = sshll.u32 %s1065_s6, 10  ;;  %s688_s18 = sshll.u32 %s297_s9, 4  ;;  %s1236_s18 = int_to_ptr.vmem [resolvable:$true] %s688_s18 }
  0x3b   : > { %v399_v22 = vld [vmem:[%s1284_s3] sm:$0xff]  ;;  %v402_v30 = vld [vmem:[%s1284_s3 + $0x18] sm:$0xff]  ;;  %v404_v33 = vld [vmem:[%s1285_s4 + $0x8] sm:$0xff]  ;;  %s1234_s21 = scalar_lea.hbm %s1288_s7, %s789_s12  ;;  %s675_s6 = scalar_lea.sflag [#allocation5], %s1141_s10 }
  0x3c   : > { %310 = vadd.xlane.f32.xlu1 %v309_v7  ;;  %813 = vmatprep.mubr.msk.f32.mxu1 %vm407_vm2, %v399_v22  ;;  %v323_v23 = vld [vmem:[%s1283_s2] sm:$0x3]  ;;  %v406_v38 = vld [vmem:[%s1285_s4 + $0x18] sm:$0xff]  ;;  %v405_v42 = vld [vmem:[%s1285_s4 + $0x10] sm:$0xff]  ;;  %s926_s23 = scalar_lea.vmem %s1236_s18, 1024  ;;  %p1297_p12 = scmp.ne.s32.totalorder %s1293_s14, 0 }
  0x3d   : > { %v533_v31 = vld [vmem:[%s1286_s5] sm:$0x1]  ;;  %p927_p11 = scmp.ne.s32.totalorder %s1236_s18, %s926_s23  ;;  %s998_s24 = smov [#allocation6]  }
  0x3e   : > { %313 = vadd.xlane.f32.xlu0 %v312_v10  ;;  %v403_v35 = vld [vmem:[%s1285_s4] sm:$0xff]  ;;  %s930_s25 = sshll.u32 %s998_s24, 4  ;;  %s931_s25 = int_to_ptr.vmem [resolvable:$false] %s930_s25 }
  0x3f   : > { %v535_v62 = vstv %s534_s30  ;;  %p928_p13 = pnand %p927_p11, %p1297_p12  ;;  %s932_s16 = scalar_lea.vmem %s931_s25, 2048 }
  0x40   : > { %307 = vadd.xlane.f32.xlu1 %v306_v11  ;;  %p933_p5 = scmp.lt.s32.totalorder %s1236_s18, %s931_s25  ;;  %p934_p7 = scmp.lt.s32.totalorder %s932_s16, %s926_s23 }
  0x41   : > { %p929_p4 = pneg %p928_p13 }
  0x42   : > { %p935_p8 = por %p934_p7, %p933_p5 }
  0x44   : > { %p936_p10 = pnand %p935_p8, %p929_p4 }
  0xc3   : > { %v317_v13 = vpop.xlane.xlu0 %316 }
  0xc4   : > { %v321_v14 = vmul.f32 0.00390625, %v317_v13 }
  0xc5   : > { %v311_v15 = vpop.xlane.xlu1 %310 }
  0xc6   : > { %801 = vmatpush3.msra.mxu0 %v321_v14  ;;  %v319_v19 = vmul.f32 0.00390625, %v311_v15 }
  0xc7   : > { %v314_v16 = vpop.xlane.xlu0 %313  ;;  %802 = vmatprep.subr.mxu0 %v995_v12 }
  0xc8   : > { %v320_v17 = vmul.f32 0.00390625, %v314_v16  ;;  %v642_v16 = vlaneseq }
  0xc9   : > { %v308_v18 = vpop.xlane.xlu1 %307 }
  0xca   : > { %803 = vmatpush3.msra.mxu0 %v320_v17  ;;  %v318_v20 = vmul.f32 0.00390625, %v308_v18  ;;  %v643_v17 = vshrl.u32 %v642_v16, 7 }
  0xcb   : > { %804 = vmatprep.subr.mxu0 %v995_v12 }
  0xcc   : > { %805 = vmatpush3.msra.mxu0 %v319_v19  ;;  %v644_v19 = vsub.s32 0, %v643_v17 }
  0xcd   : > { %806 = vmatprep.subr.mxu0 %v995_v12 }
  0xce   : > { %807 = vmatpush3.msra.mxu0 %v318_v20 }
  0xcf   : > { %809 = vmatmul.mubr.msk.f32.vlgmr.msra.gmra.mxu0 %vm324_vm1, %v322_v21 }
 0x18f   : > { %v394_v24 = vpop.f32.mrf.mxu0 }
 0x190   : > { %v395_v25 = vadd.f32 %v394_v24, %v323_v23 }
 0x191   : > { %v810_v26 = vpop.f32.mrf.mxu0 }
 0x192   : > { %v398_v27 = vmax.f32 %v395_v25, 0.0 }
 0x194   : > { %811 = vmatprep.subr.msk.mxu1 %vm420_vm3, %v398_v27 }
 0x195   : > { %812 = vmatpush3.msk.msra.mxu1 %vm420_vm3, %v398_v27 }
 0x196   : > { %814 = vmatmul.mubr.msk.f32.vlgmr.msra.gmra.mxu1 %vm407_vm2, %v400_v28  ;;  %563 = vmatprep.subr.mxu1 %v1153_v1 }
 0x197   : > { %816 = vmatprep.mubr.msk.f32.mxu1 %vm407_vm2, %v401_v29  ;;  %564 = vmatpush1.msra.mxu1 %v1151_v0 }
 0x198   : > { %565 = vmatprep.subr.mxu1 %v1159_v4 }
 0x199   : > { %566 = vmatpush1.msra.mxu1 %v1155_v2 }
 0x19a   : > { %817 = vmatmul.mubr.msk.f32.gmra.mxu1 %vm407_vm2, %v402_v30  ;;  %567 = vmatprep.subr.mxu1 %v1163_v6 }
 0x19b   : > { %568 = vmatpush1.msra.mxu1 %v1161_v5  ;;  %603 = vmatprep.mubr.f32.mxu1 %v995_v12 }
 0x19c   : > { %569 = vmatprep.subr.mxu1 %v1169_v9 }
 0x19d   : > { %570 = vmatpush1.msra.mxu1 %v1167_v8 }
 0x19e   : > { %780 = vmatmul.mubr.msk.f32.vlgmr.msra.gmra.mxu1 %vm324_vm1, %v533_v31 }
 0x256   : > { %v815_v34 = vpop.f32.mrf.mxu1 }
 0x257   : > { %v496_v36 = vadd.f32 %v815_v34, %v404_v33 }
 0x258   : > { %v490_v37 = vpop.f32.mrf.mxu1 }
 0x259   : > { %v777_v39 = vmul.f32 -1.442695, %v496_v36  ;;  %v491_v40 = vadd.f32 %v490_v37, %v403_v35 }
 0x25a   : > { %v818_v41 = vpop.f32.mrf.mxu1 }
 0x25b   : > { %874 = vpow2.f32 %v777_v39  ;;  %v776_v43 = vmul.f32 -1.442695, %v491_v40  ;;  %v506_v44 = vadd.f32 %v818_v41, %v406_v38 }
 0x25c   : > { %v500_v45 = vpop.f32.mrf.mxu1 }
 0x25d   : > { %876 = vpow2.f32 %v776_v43  ;;  %v779_v46 = vmul.f32 -1.442695, %v506_v44  ;;  %v501_v47 = vadd.f32 %v500_v45, %v405_v42 }
 0x25e   : > { %v605_v61 = vpop.f32.mrf.mxu1 }
 0x25f   : > { %v778_v48 = vmul.f32 -1.442695, %v501_v47  ;;  %878 = vpow2.f32 %v779_v46  ;;  %v606_v3 = vadd.f32 %v605_v61, %v535_v62 }
 0x260   : > { %v607_v63 = vpop.f32.mrf.mxu1 }
 0x261   : > { %880 = vpow2.f32 %v778_v48  ;;  %v608_v7 = vadd.f32 %v607_v63, %v535_v62  ;;  %v781_v10 = vmul.f32 -1.442695, %v606_v3 }
 0x263   : > { %v782_v11 = vmul.f32 -1.442695, %v608_v7 }
 0x268   : > { %v875_v49 = vpop.eup %874 }
 0x269   : > { %v522_v50 = vadd.f32 1.0, %v875_v49 }
 0x26a   : > { %v877_v51 = vpop.eup %876 }
 0x26b   : > { %882 = vrcp.f32 %v522_v50  ;;  %v521_v52 = vadd.f32 1.0, %v877_v51 }
 0x26c   : > { %v879_v53 = vpop.eup %878 }
 0x26d   : > { %884 = vrcp.f32 %v521_v52  ;;  %v524_v56 = vadd.f32 1.0, %v879_v53 }
 0x26e   : > { %v881_v54 = vpop.eup %880 }
 0x26f   : > { %v523_v55 = vadd.f32 1.0, %v881_v54 }
 0x271   : > { %886 = vrcp.f32 %v523_v55 }
 0x272   : > { %888 = vrcp.f32 %v524_v56 }
 0x273   : > { %890 = vpow2.f32 %v781_v10 }
 0x274   : > { %892 = vpow2.f32 %v782_v11 }
 0x278   : > { %v883_v57 = vpop.eup %882 }
 0x279   : > { %629 = vperm.xlu1 %873, %v883_v57  }
 0x27a   : > { %v885_v58 = vpop.eup %884 }
 0x27b   : > { %624 = vperm.xlu0 %872, %v885_v58  }
 0x27e   : > { %v887_v59 = vpop.eup %886 }
 0x27f   : > { %634 = vperm.xlu1 %873, %v887_v59   ;;  %v889_v60 = vpop.eup %888 }
 0x280   : > { %v891_v12 = vpop.eup %890 }
 0x281   : > { %v893_v13 = vpop.eup %892  ;;  %v616_v14 = vadd.f32 1.0, %v891_v12 }
 0x282   : > { %v617_v15 = vadd.f32 1.0, %v893_v13 }
 0x283   : > { %639 = vperm.xlu1 %873, %v889_v60   ;;  %894 = vrcp.f32 %v616_v14 }
 0x284   : > { %896 = vrcp.f32 %v617_v15 }
 0x290   : > { %v895_v18 = vpop.eup %894 }
 0x291   : > { %v897_v20 = vpop.eup %896  ;;  %v645_v21 = vrot.slane %v895_v18, %v644_v19 }
 0x292   : > { %v649_v22 = vrot.slane %v897_v20, %v644_v19 }
 0x2f4   : > { %v630_v23 = vpop.permute.xlu1 %629 }
 0x2f5   : > { %v652_v24 = vadd.f32 %v645_v21, %v630_v23  ;;  %v653_v25 = vadd.f32 %v649_v22, %v630_v23 }
 0x2f6   : > { %v625_v26 = vpop.permute.xlu0 %624 }
 0x2f7   : > { %v660_v27 = vmul.f32 %v652_v24, %v1161_v5  ;;  %v661_v28 = vmul.f32 %v653_v25, %v1163_v6  ;;  %v650_v29 = vadd.f32 %v645_v21, %v625_v26  ;;  %v651_v30 = vadd.f32 %v649_v22, %v625_v26 }
 0x2f9   : > { %668 = vst [vmem:[%s297_s9 + $0x10] sm:$0xff] %v660_v27  ;;  %669 = vst [vmem:[%s297_s9 + $0x18] sm:$0xff] %v661_v28  ;;  %v658_v31 = vmul.f32 %v650_v29, %v1167_v8  ;;  %v659_v32 = vmul.f32 %v651_v30, %v1169_v9 }
 0x2fa   : > { %v635_v33 = vpop.permute.xlu1 %634 }
 0x2fb   : > { %666 = vst [vmem:[%s297_s9] sm:$0xff] %v658_v31  ;;  %667 = vst [vmem:[%s297_s9 + $0x8] sm:$0xff] %v659_v32  ;;  %v654_v34 = vadd.f32 %v645_v21, %v635_v33  ;;  %v655_v35 = vadd.f32 %v649_v22, %v635_v33 }
 0x2fd   : > { %v662_v5 = vmul.f32 %v654_v34, %v1155_v2  ;;  %v663_v6 = vmul.f32 %v655_v35, %v1159_v4 }
 0x2fe   : > { %v640_v36 = vpop.permute.xlu1 %639 }
 0x2ff   : > { %670 = vst [vmem:[%s297_s9 + $0x20] sm:$0xff] %v662_v5  ;;  %671 = vst [vmem:[%s297_s9 + $0x28] sm:$0xff] %v663_v6  ;;  %v656_v37 = vadd.f32 %v645_v21, %v640_v36  ;;  %v657_v8 = vadd.f32 %v649_v22, %v640_v36 }
 0x301   : > { %v664_v2 = vmul.f32 %v656_v37, %v1151_v0  ;;  %v665_v4 = vmul.f32 %v657_v8, %v1153_v1 }
 0x303   : > { %672 = vst [vmem:[%s297_s9 + $0x30] sm:$0xff] %v664_v2  ;;  %673 = vst [vmem:[%s297_s9 + $0x38] sm:$0xff] %v665_v4 }
 0x304   : > { %939 = shalt.err (!%p936_p10)
}
 0x305   : > { %s940_s19 = scalar_lea.hbm %s1234_s21, 1024  ;;  %s944_s30 = scalar_lea.hbm %s1288_s7, 2048 }
 0x306   : > { %p941_p0 = scmp.ne.s32.totalorder %s1234_s21, %s940_s19  ;;  %p945_p1 = scmp.lt.s32.totalorder %s1234_s21, %s1288_s7 }
 0x307   : > { %p946_p3 = scmp.lt.s32.totalorder %s944_s30, %s940_s19 }
 0x308   : > { %p942_p2 = pnand %p941_p0, %p1297_p12 }
 0x309   : > { %p947_p6 = por %p946_p3, %p945_p1 }
 0x30a   : > { %p943_p9 = pneg %p942_p2 }
 0x30c   : > { %p948_p11 = pnand %p947_p6, %p943_p9 }
 0x30e   : > { %951 = shalt.err (!%p948_p11)
}
 0x30f   : > { %s999_s17 = smov 256   ;;  %s1000_s13 = smov 16  }
 0x310   : > { %821 = dma.vmem_to_hbm [thread:$0]  (%p1297_p12), %s1236_s18, 1024, %s1234_s21, %s675_s6, %s999_s17, %s999_s17, %s1000_s13  }
 0x311 PF: > { %s703_s23 = sand.u32 1, %s978_s26   ;;  %p1298_p13 = scmp.ne.s32.totalorder %s1294_s15, 0 }
 0x312   : > { %p1299_p4 = scmp.ge.s32.totalorder %s990_s29, 2  ;;  %s704_s24 = scalar_lea.sflag [#allocation5], %s703_s23 }
 0x314   : > { %p828_p5 = pnand %p1299_p4, %p1298_p13 }
 0x316   : > { %p829_p7 = pneg %p828_p5 }
 0x318   : > { %973 = dma.done.wait (%p829_p7), %s704_s24, 1024  }
 0x319   : > { %975 = vsyncadd (%p829_p7), %s704_s24, 4294966272  ;;  %p21_p8 = scmp.ge.s32.totalorder %s1069_s8, 4   ;;  %s1300_s26 = smov %s982_s27 }
 0x31a   : > { %s1301_s27 = smov %s986_s28  ;;  %s1302_s28 = smov %s1081_s11 }
 0x31b   : > { %s1303_s29 = smov %s1069_s8  ;;  %23 = sbr.rel (!%p21_p8) target bundleno = 7 (0x7), region = 93 }
 0x320   :  { %709 = vsyncpa [#allocation4], 1 }
 0x321   :  { %711 = vsyncpa [#allocation4 + $0x1], 1 }
 0x322   :  { %712 = vsyncpa [#allocation5], 1 }
 0x323   :  { %714 = vsyncpa [#allocation5 + $0x1], 1 }

</bundles_post_ra>
